<compile_context>
chip_gen: v7x
topology: tpu7x:2x2x1
jax: 0.10.0
libtpu: 0.0.40
codegen_flags: <defaults>
</compile_context>

<pallas_src>
import numpy as np

import jax
import jax.numpy as jnp
from jax.experimental import pallas as pl
from jax.experimental.pallas import tpu as pltpu


def _round_up(a: int, b: int) -> int:
    return ((a + b - 1) // b) * b


def _vmem_capacity_bytes() -> int:
    try:
        return int(pltpu.get_tpu_info().vmem_capacity_bytes)
    except Exception:
        return 64 * 2 ** 20  # conservative default (v7x)


# ----------------------------------------------------------------------------
# Kernel
# ----------------------------------------------------------------------------
def _make_ffn_kernel(*, resident: bool, acc_in_out: bool, compute_dtype):
    """Builds the FFN kernel body.

    Refs:
      x_ref : (tm, Ep)          input rows (any dtype; cast to compute_dtype)
      w1_ref: (nK, Ep, tk) resident  or (1, Ep, tk) streamed   (compute_dtype)
      b1_ref: (nK, 1,  tk) resident  or (1, 1,  tk) streamed   (f32)
      w2_ref: (nK, tk, Ep) resident  or (1, tk, Ep) streamed   (compute_dtype)
      b2_ref: (1, Ep)                                           (f32)
      o_ref : (tm, Ep)   output; doubles as the f32 accumulator when
                         acc_in_out (out dtype == f32), otherwise scratch[0]
                         is the resident f32 accumulator.
    """

    def kernel(x_ref, w1_ref, b1_ref, w2_ref, b2_ref, o_ref, *scratch):
        k = pl.program_id(1)
        acc_ref = o_ref if acc_in_out else scratch[0]

        @pl.when(k == 0)
        def _init():
            acc_ref[...] = jnp.zeros_like(acc_ref)

        x = x_ref[...].astype(compute_dtype)

        # Leading-axis (dynamic) index only -> no lane/sublane dynamic slicing.
        if resident:
            w1 = w1_ref[k]
            b1 = b1_ref[k]
            w2 = w2_ref[k]
        else:
            w1 = w1_ref[0]
            b1 = b1_ref[0]
            w2 = w2_ref[0]

        # (tm, Ep) @ (Ep, tk) -> f32 on the MXU
        h = jnp.dot(x, w1, preferred_element_type=jnp.float32)
        # bias + ReLU epilogue in f32 (VPU)
        h = jnp.maximum(h + b1, 0.0)
        # (tm, tk) @ (tk, Ep) accumulated in f32
        acc_ref[...] += jnp.dot(h.astype(compute_dtype), w2,
                                preferred_element_type=jnp.float32)

        @pl.when(k == pl.num_programs(1) - 1)
        def _finalize():
            if acc_in_out:
                o_ref[...] += b2_ref[...]
            else:
                o_ref[...] = (acc_ref[...] + b2_ref[...]).astype(o_ref.dtype)

    return kernel


# ----------------------------------------------------------------------------
# One-time weight preparation (hoisted out of the per-call path)
# ----------------------------------------------------------------------------
def prepare_ffn_params(w1, b1, w2, b2, *, block_dff: int = 1024,
                       compute_dtype=jnp.bfloat16):
    """Pad to lane-dense (multiples of 128), cast to the MXU dtype, and chunk
    the dff dimension so the kernel only indexes the leading axis.

    w1: (E, dff), b1: (dff,), w2: (dff, E), b2: (E,)
    (pre-transposed relative to PyTorch nn.Linear).
    """
    E, dff = w1.shape
    assert w2.shape == (dff, E) and b1.shape == (dff,) and b2.shape == (E,)

    Ep = _round_up(E, 128)
    tk = _round_up(min(block_dff, _round_up(dff, 128)), 128)
    dffp = _round_up(_round_up(dff, 128), tk)
    nK = dffp // tk

    cdt = compute_dtype
    w1p = jnp.zeros((Ep, dffp), cdt).at[:E, :dff].set(w1.astype(cdt))
    w2p = jnp.zeros((dffp, Ep), cdt).at[:dff, :E].set(w2.astype(cdt))
    b1p = jnp.zeros((dffp,), jnp.float32).at[:dff].set(b1.astype(jnp.float32))
    b2p = jnp.zeros((1, Ep), jnp.float32).at[0, :E].set(b2.astype(jnp.float32))

    # dff-chunked layouts: chunk k lives on the leading axis.
    w1c = w1p.reshape(Ep, nK, tk).transpose(1, 0, 2)   # (nK, Ep, tk)
    w2c = w2p.reshape(nK, tk, Ep)                      # (nK, tk, Ep)
    b1c = b1p.reshape(nK, 1, tk)                       # (nK, 1,  tk)

    return dict(w1=w1c, b1=b1c, w2=w2c, b2=b2p,
                E=E, dff=dff, Ep=Ep, dffp=dffp, tk=tk, nK=nK,
                compute_dtype=cdt)


# ----------------------------------------------------------------------------
# Per-call wrapper
# ----------------------------------------------------------------------------
def feed_forward_network(x, params, *, tm=None, force_resident=None):
    """y = relu(x @ W1 + b1) @ W2 + b2, x: (..., E)."""
    orig_shape = x.shape
    out_dtype = x.dtype
    E, Ep, dffp = params["E"], params["Ep"], params["dffp"]
    tk, nK = params["tk"], params["nK"]
    cdt = params["compute_dtype"]
    assert orig_shape[-1] == E

    x2d = x.reshape(-1, E)
    M = x2d.shape[0]

    vmem_cap = _vmem_capacity_bytes()
    if tm is None:
        # v7x (64 MiB VMEM): 512; v5e/v6e (128 MiB): 1024.
        tm = 512 if vmem_cap < 96 * 2 ** 20 else 1024

    cdt_itm = np.dtype(cdt).itemsize
    out_itm = np.dtype(out_dtype).itemsize
    acc_in_out = (out_dtype == jnp.float32)

    def vmem_est(resident, tm_e, x_itm):
        xb = 2 * x_itm * tm_e * Ep                       # x tile, double-buffered
        ob = 2 * out_itm * tm_e * Ep                     # out tile
        if resident:
            wb = 2 * cdt_itm * 2 * (nK * Ep * tk)        # W1 + W2, 2 buffers each
            bb = 2 * 4 * (nK * tk + Ep)
        else:
            wb = 2 * cdt_itm * 2 * (Ep * tk)             # one dff chunk of W1 + W2
            bb = 2 * 4 * (tk + Ep)
        acc = 0 if acc_in_out else 4 * tm_e * Ep
        h = 4 * tm_e * tk                                # f32 intermediate
        return xb + ob + wb + bb + acc + h

    # ---- row tile: MXU-friendly, bf16-packed-sublane multiple of 16 --------
    tm_e = _round_up(min(tm, _round_up(M, 16)), 16)
    x_itm_worst = max(cdt_itm, np.dtype(x.dtype).itemsize)
    while vmem_est(False, tm_e, x_itm_worst) > 0.8 * vmem_cap and tm_e > 16:
        tm_e = max(16, _round_up(tm_e // 2, 16))

    # v7x megacore balance: even number of row tiles when there is more than 1.
    ntiles = -(-M // tm_e)
    if ntiles > 1 and ntiles % 2 == 1:
        ntiles += 1
        tm_e = _round_up(-(-M // ntiles), 16)
    Mp = tm_e * ntiles

    # ---- weights-resident fast path ----------------------------------------
    if force_resident is None:
        resident = vmem_est(True, tm_e, x_itm_worst) <= 0.7 * vmem_cap
    else:
        resident = bool(force_resident)

    # ---- x: skip the pad/cast XLA pass when the layout already fits --------
    if E == Ep and M == Mp:
        xp = x2d                     # streamed as-is, cast to bf16 in-kernel
    else:
        xp = jnp.zeros((Mp, Ep), cdt).at[:M, :E].set(x2d.astype(cdt))
    x_itm = np.dtype(xp.dtype).itemsize

    w1c, b1c, w2c, b2p = params["w1"], params["b1"], params["w2"], params["b2"]
    grid = (ntiles, nK)                                  # reduction axis last

    if resident:
        w1_spec = pl.BlockSpec((nK, Ep, tk), lambda i, k: (0, 0, 0))
        b1_spec = pl.BlockSpec((nK, 1, tk), lambda i, k: (0, 0, 0))
        w2_spec = pl.BlockSpec((nK, tk, Ep), lambda i, k: (0, 0, 0))
    else:
        # TODO(synk): consider pipeline_mode=pl.Buffered(3) on these two specs
        # on v7x if profiling shows exposed weight DMA at small M.
        w1_spec = pl.BlockSpec((1, Ep, tk), lambda i, k: (k, 0, 0))
        b1_spec = pl.BlockSpec((1, 1, tk), lambda i, k: (k, 0, 0))
        w2_spec = pl.BlockSpec((1, tk, Ep), lambda i, k: (k, 0, 0))

    scratch_shapes = [] if acc_in_out else [pltpu.VMEM((tm_e, Ep), jnp.float32)]

    est = vmem_est(resident, tm_e, x_itm)
    vmem_limit = int(min(max(32 * 2 ** 20, 2 * est), int(0.85 * vmem_cap)))

    # ---- cost estimate (weights re-streamed per row tile unless resident) --
    weight_passes = 1 if resident else ntiles
    bytes_accessed = int(
        Mp * Ep * x_itm
        + weight_passes * (2 * nK * Ep * tk * cdt_itm + nK * tk * 4)
        + Ep * 4
        + Mp * Ep * out_itm)
    cost = pl.CostEstimate(flops=int(4 * Mp * Ep * dffp),
                           transcendentals=0,
                           bytes_accessed=bytes_accessed)

    kernel = _make_ffn_kernel(resident=resident, acc_in_out=acc_in_out,
                              compute_dtype=cdt)

    out2d = pl.pallas_call(
        kernel,
        out_shape=jax.ShapeDtypeStruct((Mp, Ep), out_dtype),
        grid_spec=pltpu.PrefetchScalarGridSpec(
            num_scalar_prefetch=0,
            grid=grid,
            in_specs=[
                pl.BlockSpec((tm_e, Ep), lambda i, k: (i, 0)),   # x row tile
                w1_spec,                                         # W1 (chunked)
                b1_spec,                                         # b1 (chunked)
                w2_spec,                                         # W2 (chunked)
                pl.BlockSpec((1, Ep), lambda i, k: (0, 0)),      # b2
            ],
            out_specs=pl.BlockSpec((tm_e, Ep), lambda i, k: (i, 0)),
            scratch_shapes=scratch_shapes,
        ),
        compiler_params=pltpu.CompilerParams(
            dimension_semantics=("parallel", "arbitrary"),
            vmem_limit_bytes=vmem_limit,
        ),
        cost_estimate=cost,
    )(xp, w1c, b1c, w2c, b2p)

    if Mp == M and Ep == E:
        return out2d.reshape(orig_shape)
    return out2d[:M, :E].reshape(orig_shape)


# ----------------------------------------------------------------------------
# Self-test
# ----------------------------------------------------------------------------
if __name__ == "__main__":
    key = jax.random.PRNGKey(0)

    def ref_f32(x, w1, b1, w2, b2):
        return jnp.maximum(x @ w1 + b1, 0.0) @ w2 + b2

    def ref_bf16(x, w1, b1, w2, b2):
        h = jnp.dot(x.astype(jnp.bfloat16), w1.astype(jnp.bfloat16),
                    preferred_element_type=jnp.float32) + b1
        return jnp.dot(jnp.maximum(h, 0.0).astype(jnp.bfloat16),
                       w2.astype(jnp.bfloat16),
                       preferred_element_type=jnp.float32) + b2

    # ---- Test 1: small module shapes (padding path, f32 out, resident) -----
    batch, seq, embed_dim, dff = 2, 8, 32, 64
    kx, kw1, kb1, kw2, kb2 = jax.random.split(key, 5)
    x = jax.random.normal(kx, (batch, seq, embed_dim), dtype=jnp.float32)
    w1 = jax.random.normal(kw1, (embed_dim, dff), dtype=jnp.float32) * 0.1
    b1 = jax.random.normal(kb1, (dff,), dtype=jnp.float32) * 0.1
    w2 = jax.random.normal(kw2, (dff, embed_dim), dtype=jnp.float32) * 0.1
    b2 = jax.random.normal(kb2, (embed_dim,), dtype=jnp.float32) * 0.1

    params = prepare_ffn_params(w1, b1, w2, b2)       # one-time pad/cast/chunk
    out = jax.block_until_ready(feed_forward_network(x, params))
    assert out.shape == x.shape
    r32 = ref_f32(x, w1, b1, w2, b2)
    rbf = ref_bf16(x, w1, b1, w2, b2)
    assert jnp.allclose(out, r32, atol=2e-2, rtol=2e-2), \
        float(jnp.max(jnp.abs(out - r32)))
    assert jnp.allclose(out, rbf, atol=2e-3, rtol=2e-3), \
        float(jnp.max(jnp.abs(out - rbf)))

    # ---- Test 2: 128-aligned E (no-pad x path), multi-chunk dff, resident ---
    E2, dff2 = 128, 256
    k2 = jax.random.split(jax.random.PRNGKey(1), 5)
    x2 = jax.random.normal(k2[0], (batch, seq, E2), dtype=jnp.float32)
    w1_2 = jax.random.normal(k2[1], (E2, dff2), dtype=jnp.float32) * 0.05
    b1_2 = jax.random.normal(k2[2], (dff2,), dtype=jnp.float32) * 0.05
    w2_2 = jax.random.normal(k2[3], (dff2, E2), dtype=jnp.float32) * 0.05
    b2_2 = jax.random.normal(k2[4], (E2,), dtype=jnp.float32) * 0.05
    params2 = prepare_ffn_params(w1_2, b1_2, w2_2, b2_2, block_dff=128)  # nK=2
    r2 = ref_bf16(x2, w1_2, b1_2, w2_2, b2_2)

    out2 = jax.block_until_ready(feed_forward_network(x2, params2))
    assert jnp.allclose(out2, r2, atol=3e-3, rtol=3e-3), \
        float(jnp.max(jnp.abs(out2 - r2)))

    # ---- Test 3: same, forcing the streaming (non-resident) weight path -----
    out3 = jax.block_until_ready(
        feed_forward_network(x2, params2, force_resident=False))
    assert jnp.allclose(out3, r2, atol=3e-3, rtol=3e-3), \
        float(jnp.max(jnp.abs(out3 - r2)))

    # ---- Test 4: bf16 activations (scratch-accumulator / cast-output path) --
    xb = x.astype(jnp.bfloat16)
    out4 = jax.block_until_ready(feed_forward_network(xb, params))
    assert out4.dtype == jnp.bfloat16
    assert jnp.allclose(out4.astype(jnp.float32), r32, atol=3e-2, rtol=3e-2), \
        float(jnp.max(jnp.abs(out4.astype(jnp.float32) - r32)))

    print("KERNEL_OK")
</pallas_src>

<mosaic_0001>
module attributes {stable_mosaic.version = 11 : i64} {
  func.func @kernel(%arg0: i32, %arg1: i32, %arg2: memref<16x128xbf16, #tpu.memory_space<vmem>>, %arg3: memref<1x128x128xbf16, #tpu.memory_space<vmem>>, %arg4: memref<1x1x128xf32, #tpu.memory_space<vmem>>, %arg5: memref<1x128x128xbf16, #tpu.memory_space<vmem>>, %arg6: memref<1x128xf32, #tpu.memory_space<vmem>>, %arg7: memref<16x128xf32, #tpu.memory_space<vmem>>) attributes {dimension_semantics = [#tpu.dimension_semantics<parallel>, #tpu.dimension_semantics<arbitrary>], iteration_bounds = array<i64: 1, 1>, scalar_prefetch = 0 : i64, scratch_operands = 0 : i64, tpu.core_type = #tpu.core_type<tc>, window_params = [{transform_indices = @transform_0, window_bounds = array<i64: 16, 128>}, {pipeline_mode = #tpu.pipeline_mode<synchronous>, transform_indices = @transform_1, window_bounds = array<i64: 1, 128, 128>}, {pipeline_mode = #tpu.pipeline_mode<synchronous>, transform_indices = @transform_2, window_bounds = array<i64: 1, 1, 128>}, {pipeline_mode = #tpu.pipeline_mode<synchronous>, transform_indices = @transform_3, window_bounds = array<i64: 1, 128, 128>}, {pipeline_mode = #tpu.pipeline_mode<synchronous>, transform_indices = @transform_4, window_bounds = array<i64: 1, 128>}, {transform_indices = @transform_5, window_bounds = array<i64: 16, 128>}]} {
    %c0_i32 = arith.constant 0 : i32
    %0 = arith.cmpi eq, %arg1, %c0_i32 : i32
    %1 = arith.extui %0 : i1 to i32
    %c0_i32_0 = arith.constant 0 : i32
    %2 = arith.cmpi ne, %1, %c0_i32_0 : i32
    scf.if %2 {
      %cst_16 = arith.constant 0.000000e+00 : f32
      %26 = vector.broadcast %cst_16 : f32 to vector<16x128xf32>
      %c0_17 = arith.constant 0 : index
      %c0_18 = arith.constant 0 : index
      %27 = vector.load %arg7[%c0_17, %c0_18] : memref<16x128xf32, #tpu.memory_space<vmem>>, vector<16x128xf32>
      tpu.vector_store %arg7[%c0_17, %c0_18], %26 {strides = array<i32>} : memref<16x128xf32, #tpu.memory_space<vmem>>, vector<16x128xf32>,
    } else {
    }
    %c0 = arith.constant 0 : index
    %c0_1 = arith.constant 0 : index
    %3 = vector.load %arg2[%c0, %c0_1] : memref<16x128xbf16, #tpu.memory_space<vmem>>, vector<16x128xbf16>
    %4 = arith.index_cast %arg1 : i32 to index
    %c0_2 = arith.constant 0 : index
    %c0_3 = arith.constant 0 : index
    %5 = vector.load %arg3[%4, %c0_2, %c0_3] : memref<1x128x128xbf16, #tpu.memory_space<vmem>>, vector<1x128x128xbf16>
    %6 = vector.shape_cast %5 : vector<1x128x128xbf16> to vector<128x128xbf16>
    %7 = arith.index_cast %arg1 : i32 to index
    %c0_4 = arith.constant 0 : index
    %c0_5 = arith.constant 0 : index
    %8 = vector.load %arg4[%7, %c0_4, %c0_5] : memref<1x1x128xf32, #tpu.memory_space<vmem>>, vector<1x1x128xf32>
    %9 = vector.shape_cast %8 : vector<1x1x128xf32> to vector<1x128xf32>
    %10 = arith.index_cast %arg1 : i32 to index
    %c0_6 = arith.constant 0 : index
    %c0_7 = arith.constant 0 : index
    %11 = vector.load %arg5[%10, %c0_6, %c0_7] : memref<1x128x128xbf16, #tpu.memory_space<vmem>>, vector<1x128x128xbf16>
    %12 = vector.shape_cast %11 : vector<1x128x128xbf16> to vector<128x128xbf16>
    %cst = arith.constant dense<0.000000e+00> : vector<16x128xf32>
    %13 = tpu.matmul %3, %6, %cst {dimension_numbers = #tpu.dot_dimension_numbers<[1], [0], [0], [1], [0, 0, 1, 1], [], []>} : vector<16x128xbf16>, vector<128x128xbf16>, vector<16x128xf32> -> vector<16x128xf32>
    %14 = vector.broadcast %9 : vector<1x128xf32> to vector<16x128xf32>
    %15 = arith.addf %13, %14 : vector<16x128xf32>
    %cst_8 = arith.constant 0.000000e+00 : f32
    %16 = vector.broadcast %cst_8 : f32 to vector<16x128xf32>
    %17 = arith.maximumf %15, %16 : vector<16x128xf32>
    %c0_9 = arith.constant 0 : index
    %c0_10 = arith.constant 0 : index
    %18 = vector.load %arg7[%c0_9, %c0_10] : memref<16x128xf32, #tpu.memory_space<vmem>>, vector<16x128xf32>
    %19 = arith.truncf %17 : vector<16x128xf32> to vector<16x128xbf16>
    %cst_11 = arith.constant dense<0.000000e+00> : vector<16x128xf32>
    %20 = tpu.matmul %19, %12, %cst_11 {dimension_numbers = #tpu.dot_dimension_numbers<[1], [0], [0], [1], [0, 0, 1, 1], [], []>} : vector<16x128xbf16>, vector<128x128xbf16>, vector<16x128xf32> -> vector<16x128xf32>
    %21 = arith.addf %18, %20 : vector<16x128xf32>
    %c0_12 = arith.constant 0 : index
    %c0_13 = arith.constant 0 : index
    %22 = vector.load %arg7[%c0_12, %c0_13] : memref<16x128xf32, #tpu.memory_space<vmem>>, vector<16x128xf32>
    tpu.vector_store %arg7[%c0_12, %c0_13], %21 {strides = array<i32>} : memref<16x128xf32, #tpu.memory_space<vmem>>, vector<16x128xf32>,
    %c0_i32_14 = arith.constant 0 : i32
    %23 = arith.cmpi eq, %arg1, %c0_i32_14 : i32
    %24 = arith.extui %23 : i1 to i32
    %c0_i32_15 = arith.constant 0 : i32
    %25 = arith.cmpi ne, %24, %c0_i32_15 : i32
    scf.if %25 {
      %c0_16 = arith.constant 0 : index
      %c0_17 = arith.constant 0 : index
      %26 = vector.load %arg7[%c0_16, %c0_17] : memref<16x128xf32, #tpu.memory_space<vmem>>, vector<16x128xf32>
      %c0_18 = arith.constant 0 : index
      %c0_19 = arith.constant 0 : index
      %27 = vector.load %arg6[%c0_18, %c0_19] : memref<1x128xf32, #tpu.memory_space<vmem>>, vector<1x128xf32>
      %28 = vector.broadcast %27 : vector<1x128xf32> to vector<16x128xf32>
      %29 = arith.addf %26, %28 : vector<16x128xf32>
      %c0_20 = arith.constant 0 : index
      %c0_21 = arith.constant 0 : index
      %30 = vector.load %arg7[%c0_20, %c0_21] : memref<16x128xf32, #tpu.memory_space<vmem>>, vector<16x128xf32>
      tpu.vector_store %arg7[%c0_20, %c0_21], %29 {strides = array<i32>} : memref<16x128xf32, #tpu.memory_space<vmem>>, vector<16x128xf32>,
    } else {
    }
    return
  }
  func.func @transform_0(%arg0: i32, %arg1: i32) -> (i32, i32) {
    %c0_i32 = arith.constant 0 : i32
    %c0_i32_0 = arith.constant 0 : i32
    return %arg0, %c0_i32 : i32, i32
  }
  func.func @transform_1(%arg0: i32, %arg1: i32) -> (i32, i32, i32) {
    %c0_i32 = arith.constant 0 : i32
    %c0_i32_0 = arith.constant 0 : i32
    %c0_i32_1 = arith.constant 0 : i32
    %c0_i32_2 = arith.constant 0 : i32
    return %c0_i32, %c0_i32_0, %c0_i32_1 : i32, i32, i32
  }
  func.func @transform_2(%arg0: i32, %arg1: i32) -> (i32, i32, i32) {
    %c0_i32 = arith.constant 0 : i32
    %c0_i32_0 = arith.constant 0 : i32
    %c0_i32_1 = arith.constant 0 : i32
    %c0_i32_2 = arith.constant 0 : i32
    return %c0_i32, %c0_i32_0, %c0_i32_1 : i32, i32, i32
  }
  func.func @transform_3(%arg0: i32, %arg1: i32) -> (i32, i32, i32) {
    %c0_i32 = arith.constant 0 : i32
    %c0_i32_0 = arith.constant 0 : i32
    %c0_i32_1 = arith.constant 0 : i32
    %c0_i32_2 = arith.constant 0 : i32
    return %c0_i32, %c0_i32_0, %c0_i32_1 : i32, i32, i32
  }
  func.func @transform_4(%arg0: i32, %arg1: i32) -> (i32, i32) {
    %c0_i32 = arith.constant 0 : i32
    %c0_i32_0 = arith.constant 0 : i32
    %c0_i32_1 = arith.constant 0 : i32
    return %c0_i32, %c0_i32_0 : i32, i32
  }
  func.func @transform_5(%arg0: i32, %arg1: i32) -> (i32, i32) {
    %c0_i32 = arith.constant 0 : i32
    %c0_i32_0 = arith.constant 0 : i32
    return %arg0, %c0_i32 : i32, i32
  }
}

</mosaic_0001>

<bundles_post_ra>
// kernel: tpu_custom_call.1
= control target key start
LH: loop header
LB: loop body
LE: loop exit
PB: predicated region body
PF: predicated region fallthrough
CT: control target
= control target key end

     0   :  { %10 = vsyncpa [#allocation3], 0  ;;  %s650_s0 = inlined_call_operand.hbm [shape: bf16[16,128], index: 0, kind: input, shape index: {}]   ;;  %s651_s1 = inlined_call_operand.hbm [shape: bf16[1,128,128], index: 1, kind: input, shape index: {}]   ;;  %s652_s2 = inlined_call_operand.vmem [shape: f32[1,1,128], index: 2, kind: input, shape index: {}]   ;;  %s653_s3 = inlined_call_operand.hbm [shape: bf16[1,128,128], index: 3, kind: input, shape index: {}]   ;;  %s654_s4 = inlined_call_operand.vmem [shape: f32[1,128], index: 4, kind: input, shape index: {}]   ;;  %s655_s5 = inlined_call_operand.hbm [shape: f32[16,128], index: 5, kind: output, shape index: {}]  }
   0x1   :  { %11 = vsyncpa [#allocation6], 0 }
   0x2   :  { %12 = vsyncpa [#allocation4], 0  ;;  %s540_s18 = smov [#allocation5]   ;;  %s541_s20 = smov [#allocation2]  }
   0x3   :  { %s30_s19 = sshll.u32 %s540_s18, 4  ;;  %s18_s21 = sshll.u32 %s541_s20, 4  ;;  %s31_s19 = int_to_ptr.vmem [resolvable:$true] %s30_s19  ;;  %s580_s21 = int_to_ptr.vmem [resolvable:$true] %s18_s21 }
   0x4   :  { %s446_s24 = scalar_lea.hbm %s651_s1, 1024 }
   0x5   :  { %p447_p0 = scmp.ne.s32.totalorder %s651_s1, %s446_s24  ;;  %p450_p1 = scmp.lt.u32.totalorder %s446_s24, %s651_s1 }
   0x7   :  { %p452_p2 = pnand %p450_p1, %p447_p0 }
   0x9   :  { %455 = shalt.err (!%p452_p2)
}
   0xa   :  { %s456_s29 = scalar_lea.vmem %s31_s19, 1024  ;;  %p461_p4 = scmp.lt.s32.totalorder %s31_s19, %s31_s19 }
   0xb   :  { %p457_p3 = scmp.ne.s32.totalorder %s31_s19, %s456_s29  ;;  %p462_p5 = scmp.lt.s32.totalorder %s456_s29, %s456_s29 }
   0xd   :  { %p463_p6 = por %p462_p5, %p461_p4 }
   0xf   :  { %p464_p7 = pnand %p463_p6, %p457_p3 }
  0x11   :  { %467 = shalt.err (!%p464_p7)
}
  0x12   :  { %s542_s30 = smov 64   ;;  %s543_s6 = smov 4  }
  0x13   :  { %36 = dma.hbm_to_vmem [thread:$0]  %s651_s1, 1024, %s31_s19, [#allocation6], %s542_s30, %s542_s30, %s543_s6  }
  0x14   :  { %s468_s11 = scalar_lea.hbm %s650_s0, 128 }
  0x15   :  { %p469_p8 = scmp.ne.s32.totalorder %s650_s0, %s468_s11  ;;  %p472_p9 = scmp.lt.u32.totalorder %s468_s11, %s650_s0 }
  0x17   :  { %p474_p10 = pnand %p472_p9, %p469_p8 }
  0x19   :  { %477 = shalt.err (!%p474_p10)
}
  0x1a   :  { %s478_s16 = scalar_lea.vmem %s580_s21, 128  ;;  %p483_p12 = scmp.lt.s32.totalorder %s580_s21, %s580_s21 }
  0x1b   :  { %p479_p11 = scmp.ne.s32.totalorder %s580_s21, %s478_s16  ;;  %p484_p13 = scmp.lt.s32.totalorder %s478_s16, %s478_s16 }
  0x1d   :  { %p485_p0 = por %p484_p13, %p483_p12 }
  0x1f   :  { %p486_p1 = pnand %p485_p0, %p479_p11 }
  0x21   :  { %489 = shalt.err (!%p486_p1)
}
  0x22   :  { %24 = dma.hbm_to_vmem [thread:$0]  %s650_s0, 128, %s580_s21, [#allocation3], %s542_s30, %s542_s30, %s543_s6  }
  0x23   :  { %s544_s18 = smov [#allocation7]   ;;  %s490_s23 = scalar_lea.hbm %s653_s3, 1024 }
  0x24   :  { %s44_s19 = sshll.u32 %s544_s18, 4  ;;  %p491_p2 = scmp.ne.s32.totalorder %s653_s3, %s490_s23  ;;  %s45_s19 = int_to_ptr.vmem [resolvable:$true] %s44_s19 }
  0x25   :  { %p494_p3 = scmp.lt.u32.totalorder %s490_s23, %s653_s3 }
  0x27   :  { %p496_p4 = pnand %p494_p3, %p491_p2 }
  0x29   :  { %499 = shalt.err (!%p496_p4)
}
  0x2a   :  { %s500_s28 = scalar_lea.vmem %s45_s19, 1024  ;;  %p505_p6 = scmp.lt.s32.totalorder %s45_s19, %s45_s19 }
  0x2b   :  { %p501_p5 = scmp.ne.s32.totalorder %s45_s19, %s500_s28  ;;  %p506_p7 = scmp.lt.s32.totalorder %s500_s28, %s500_s28 }
  0x2d   :  { %p507_p8 = por %p506_p7, %p505_p6 }
  0x2f   :  { %p508_p9 = pnand %p507_p8, %p501_p5 }
  0x31   :  { %511 = shalt.err (!%p508_p9)
}
  0x32   :  { %50 = dma.hbm_to_vmem [thread:$0]  %s653_s3, 1024, %s45_s19, [#allocation6], %s542_s30, %s542_s30, %s543_s6  }
  0x33   :  { %534 = dma.done.wait [#allocation3], 128  }
  0x34   :  { %535 = vsyncadd [#allocation3], 4294967168 }
  0x35   :  { %536 = dma.done.wait [#allocation6], 2048  }
  0x36   :  { %537 = vsyncadd [#allocation6], 4294965248  ;;  %v545_v0 = vmov 0.0   ;;  %vm546_vm0 = vmmov 0   ;;  %v429_v1 = vld [vmem:[#allocation5] sm:$0xff]   ;;  %v430_v2 = vld [vmem:[#allocation5 + $0x8] sm:$0xff]  }
  0x37   :  { %379 = vmatprep.subr.bf16.mxu0 %v545_v0  ;;  %395 = vmatprep.mubr.msk.bf16.mxu0 %vm546_vm0, %v545_v0  ;;  %v431_v3 = vld [vmem:[#allocation5 + $0x10] sm:$0xff]   ;;  %v438_v4 = vld [vmem:[#allocation7] sm:$0xff]   ;;  %v432_v5 = vld [vmem:[#allocation5 + $0x18] sm:$0xff]   ;;  %s547_s7 = smov [#allocation8]  }
  0x38   :  { %399 = vmatprep.subr.bf16.mxu1 %v545_v0  ;;  %415 = vmatprep.mubr.msk.bf16.mxu1 %vm546_vm0, %v545_v0  ;;  %v439_v6 = vld [vmem:[#allocation7 + $0x8] sm:$0xff]   ;;  %v433_v7 = vld [vmem:[#allocation5 + $0x20] sm:$0xff]   ;;  %v440_v8 = vld [vmem:[#allocation7 + $0x10] sm:$0xff]   ;;  %s329_s8 = sshll.u32 %s547_s7, 4  ;;  %s330_s8 = int_to_ptr.vmem [resolvable:$true] %s329_s8 }
  0x39   :  { %380 = vmatpush3.bf16.msra.mxu0 %v429_v1  ;;  %400 = vmatpush3.bf16.msra.mxu1 %v438_v4  ;;  %v434_v9 = vld [vmem:[#allocation5 + $0x28] sm:$0xff]   ;;  %v441_v10 = vld [vmem:[#allocation7 + $0x18] sm:$0xff]   ;;  %v435_v11 = vld [vmem:[#allocation5 + $0x30] sm:$0xff]   ;;  %p517_p11 = scmp.lt.s32.totalorder %s330_s8, %s330_s8 }
  0x3a   :  { %381 = vmatprep.subr.bf16.mxu0 %v545_v0  ;;  %401 = vmatprep.subr.bf16.mxu1 %v545_v0  ;;  %v442_v12 = vld [vmem:[#allocation7 + $0x20] sm:$0xff]   ;;  %v436_v13 = vld [vmem:[#allocation5 + $0x38] sm:$0xff]   ;;  %v443_v14 = vld [vmem:[#allocation7 + $0x28] sm:$0xff]  }
  0x3b   :  { %v437_v15 = vld [vmem:[#allocation2] sm:$0xff]   ;;  %v444_v16 = vld [vmem:[#allocation7 + $0x30] sm:$0xff]  }
  0x3c   :  { %v445_v17 = vld [vmem:[#allocation7 + $0x38] sm:$0xff]  }
  0x3d   :  { %382 = vmatpush3.bf16.msra.mxu0 %v430_v2  ;;  %402 = vmatpush3.bf16.msra.mxu1 %v439_v6  ;;  %v342_v18 = vld [vmem:[%s652_s2] ss:$0 sm:$0xff]  ;;  %s512_s2 = scalar_lea.vmem %s330_s8, 256 }
  0x3e   :  { %383 = vmatprep.subr.bf16.mxu0 %v545_v0  ;;  %403 = vmatprep.subr.bf16.mxu1 %v545_v0  ;;  %v360_v29 = vld [vmem:[%s654_s4] ss:$0 sm:$0xff]  ;;  %p513_p10 = scmp.ne.s32.totalorder %s330_s8, %s512_s2  ;;  %p518_p12 = scmp.lt.s32.totalorder %s512_s2, %s512_s2 }
  0x40   :  { %p519_p13 = por %p518_p12, %p517_p11 }
  0x41   :  { %384 = vmatpush3.bf16.msra.mxu0 %v431_v3  ;;  %404 = vmatpush3.bf16.msra.mxu1 %v440_v8 }
  0x42   :  { %385 = vmatprep.subr.bf16.mxu0 %v545_v0  ;;  %405 = vmatprep.subr.bf16.mxu1 %v545_v0  ;;  %p520_p0 = pnand %p519_p13, %p513_p10 }
  0x45   :  { %386 = vmatpush3.bf16.msra.mxu0 %v432_v5  ;;  %406 = vmatpush3.bf16.msra.mxu1 %v441_v10 }
  0x46   :  { %387 = vmatprep.subr.bf16.mxu0 %v545_v0  ;;  %407 = vmatprep.subr.bf16.mxu1 %v545_v0 }
  0x49   :  { %388 = vmatpush3.bf16.msra.mxu0 %v433_v7  ;;  %408 = vmatpush3.bf16.msra.mxu1 %v442_v12 }
  0x4a   :  { %389 = vmatprep.subr.bf16.mxu0 %v545_v0  ;;  %409 = vmatprep.subr.bf16.mxu1 %v545_v0 }
  0x4d   :  { %390 = vmatpush3.bf16.msra.mxu0 %v434_v9  ;;  %410 = vmatpush3.bf16.msra.mxu1 %v443_v14 }
  0x4e   :  { %391 = vmatprep.subr.bf16.mxu0 %v545_v0  ;;  %411 = vmatprep.subr.bf16.mxu1 %v545_v0 }
  0x51   :  { %392 = vmatpush3.bf16.msra.mxu0 %v435_v11  ;;  %412 = vmatpush3.bf16.msra.mxu1 %v444_v16 }
  0x52   :  { %393 = vmatprep.subr.bf16.mxu0 %v545_v0  ;;  %413 = vmatprep.subr.bf16.mxu1 %v545_v0 }
  0x55   :  { %394 = vmatpush3.bf16.msra.mxu0 %v436_v13  ;;  %414 = vmatpush3.bf16.msra.mxu1 %v445_v17 }
  0x58   :  { %396 = vmatmul.mubr.bf16.vlgmr.msra.gmra.mrb[0].mxu0 %v437_v15 }
 0x12b   :  { %v203_v19 = vpop.f32.mrb[0].mxu0 }
 0x12c   :  { %v204_v20 = vadd.f32 %v342_v18, %v203_v19  ;;  %v397_v21 = vpop.f32.mrb[1].mxu0 }
 0x12d   :  { %v206_v22 = vpop.f32.mrb[2].mxu0 }
 0x12e   :  { %v207_v23 = vadd.f32 %v342_v18, %v206_v22  ;;  %v398_v24 = vpop.f32.mrb[3].mxu0  ;;  %v210_v25 = vmax.f32 %v204_v20, 0.0 }
 0x130   :  { %v211_v26 = vmax.f32 %v207_v23, 0.0 }
 0x132   :  { %v214_v27 = vpack.c.bf16 %v211_v26, %v210_v25 }
 0x134   :  { %416 = vmatmul.mubr.bf16.vlgmr.msra.gmra.mrb[0].mxu1 %v214_v27 }
 0x207   :  { %v297_v28 = vpop.f32.mrb[0].mxu1 }
 0x208   :  { %v417_v30 = vpop.f32.mrb[1].mxu1  ;;  %v320_v33 = vadd.f32 %v360_v29, %v297_v28 }
 0x209   :  { %v300_v31 = vpop.f32.mrb[2].mxu1 }
 0x20a   :  { %v418_v32 = vpop.f32.mrb[3].mxu1  ;;  %v321_v34 = vadd.f32 %v360_v29, %v300_v31  ;;  %322 = vst [vmem:[#allocation8] sm:$0xff] %v320_v33 }
 0x20c   :  { %323 = vst [vmem:[#allocation8 + $0x8] sm:$0xff] %v321_v34 }
 0x20d   :  { %523 = shalt.err (!%p520_p0)
}
 0x20e   :  { %s524_s4 = scalar_lea.hbm %s655_s5, 256 }
 0x20f   :  { %p525_p1 = scmp.ne.s32.totalorder %s655_s5, %s524_s4  ;;  %p528_p2 = scmp.lt.u32.totalorder %s524_s4, %s655_s5 }
 0x211   :  { %p530_p3 = pnand %p528_p2, %p525_p1 }
 0x213   :  { %533 = shalt.err (!%p530_p3)
}
 0x214   :  { %s548_s15 = smov 128   ;;  %s549_s16 = smov 8  }
 0x215   :  { %335 = dma.vmem_to_hbm [thread:$0]  %s330_s8, 256, %s655_s5, [#allocation4], %s548_s15, %s548_s15, %s549_s16  }
 0x216   :  { %538 = dma.done.wait [#allocation4], 256  }
 0x217   :  { %539 = vsyncadd [#allocation4], 4294967040 }
 0x218   :  { %339 = vsyncpa [#allocation3], 1 }
 0x219   :  { %340 = vsyncpa [#allocation6], 1 }
 0x21a   :  { %341 = vsyncpa [#allocation4], 1 }

</bundles_post_ra>
